<compile_context>
chip_gen: v6e
topology: v6e:2x2x1
jax: 0.10.0
libtpu: 0.0.40
codegen_flags: <defaults>
</compile_context>

<pallas_src>
import functools
import math

import jax
import jax.numpy as jnp
from jax import lax
from jax.experimental import pallas as pl
from jax.experimental.pallas import tpu as pltpu

EPS = 1e-5
_NUM_SPLITS = 2      # row-range splits for the stats pass (both TCs on v7x)
_CHUNK = 512         # rows per inner accumulation chunk (bounds fp32 temps)


def _cdiv(a, b):
    return (a + b - 1) // b


# ---------------------------------------------------------------------------
# Fused single-launch kernel: whole (folded) array resident in VMEM.
# One read of x; stats, scale/bias and normalize in a single kernel.
# ---------------------------------------------------------------------------
def _fused_kernel(x_ref, gamma_ref, beta_ref, o_ref, *, m_total, feat, eps):
    x = x_ref[...].astype(jnp.float32)                 # (R, L)
    lane = x.shape[1]
    s = jnp.sum(x, axis=0, keepdims=True)              # (1, L)
    q = jnp.sum(x * x, axis=0, keepdims=True)
    # When rows were folded lane-dense (L = groups*feat, feat a power-of-two
    # divisor of 128), lane l holds feature l % feat.  Tree-combine the lane
    # groups (XLU rolls) so every lane carries the per-feature total, matching
    # the tiled gamma/beta layout.
    shift = lane // 2
    while shift >= feat:
        s = s + pltpu.roll(s, shift=shift, axis=1)
        q = q + pltpu.roll(q, shift=shift, axis=1)
        shift //= 2
    inv_m = 1.0 / m_total
    mean = s * inv_m
    var = q * inv_m - mean * mean                      # biased variance, fp32
    scale = gamma_ref[...] * lax.rsqrt(var + eps)
    bias = beta_ref[...] - mean * scale
    o_ref[...] = (x * scale + bias).astype(o_ref.dtype)


# ---------------------------------------------------------------------------
# Streaming pass 1: per-split partial sum / sum-of-squares.
#   grid = (_NUM_SPLITS, tiles_per_split), semantics = ("parallel", "arbitrary")
#   outputs: (NUM_SPLITS, 8, lane) partial sums (resident across the inner axis)
# ---------------------------------------------------------------------------
def _partial_stats_kernel(x_ref, psum_ref, psq_ref, *, ragged, m_valid, chunk):
    t = pl.program_id(1)

    @pl.when(t == 0)
    def _init():
        psum_ref[...] = jnp.zeros_like(psum_ref)
        psq_ref[...] = jnp.zeros_like(psq_ref)

    tm, lane = x_ref.shape
    # Unclamped global tile index: used for the validity mask, so tiles that
    # were clamped by the index_map (split overhang) contribute exactly zero.
    global_tile = pl.program_id(0) * pl.num_programs(1) + t
    row0 = global_tile * tm
    nchunks = tm // chunk
    zero = jnp.zeros((8, lane), jnp.float32)

    def body(j, carry):
        s, q = carry
        off = pl.multiple_of(j * chunk, chunk)
        xj = x_ref[pl.ds(off, chunk), :].astype(jnp.float32)   # (chunk, lane)
        if ragged:
            rows = row0 + j * chunk + lax.broadcasted_iota(
                jnp.int32, (chunk, lane), 0)
            xj = jnp.where(rows < m_valid, xj, 0.0)
        xr = xj.reshape(chunk // 8, 8, lane)
        # Sublane-granularity accumulation: pure VPU vreg adds in the hot loop;
        # the cross-sublane reduce happens once, outside the kernel.
        return s + jnp.sum(xr, axis=0), q + jnp.sum(xr * xr, axis=0)

    s, q = lax.fori_loop(0, nchunks, body, (zero, zero), unroll=True)
    psum_ref[...] += s.reshape(1, 8, lane)
    psq_ref[...] += q.reshape(1, 8, lane)


# ---------------------------------------------------------------------------
# Streaming pass 2: y = x * scale + bias   (scale/bias resident across steps)
# ---------------------------------------------------------------------------
def _apply_kernel(x_ref, scale_ref, bias_ref, o_ref):
    x = x_ref[...].astype(jnp.float32)
    o_ref[...] = (x * scale_ref[...] + bias_ref[...]).astype(o_ref.dtype)


def normalization_batch(x, gamma, beta):
    """nn.BatchNorm1d(D, affine=True) training-mode forward over x.view(-1, D)."""
    orig_shape = x.shape
    D = orig_shape[-1]
    M = math.prod(orig_shape[:-1])
    out_dtype = x.dtype
    itemsize = jnp.dtype(out_dtype).itemsize

    # ---- lane-dense folding (only when exact -> no host padding needed) ----
    if D < 128 and 128 % D == 0 and M % (128 // D) == 0:
        groups = 128 // D
        lane = 128
    else:
        groups = 1
        lane = D
    m_f = M // groups

    x_f = x.reshape(m_f, lane)             # contiguous reshape: no copy, no pad
    gamma_l = jnp.tile(gamma.astype(jnp.float32).reshape(1, D), (1, groups))
    beta_l = jnp.tile(beta.astype(jnp.float32).reshape(1, D), (1, groups))

    # ---- generation-aware VMEM budget ----
    try:
        info = pltpu.get_tpu_info()
        vmem_bytes = int(getattr(info, "vmem_capacity_bytes", 64 << 20))
    except Exception:  # pragma: no cover - conservative fallback (v7x-sized)
        vmem_bytes = 64 << 20

    x_f32_bytes = M * D * 4
    fused_limit = int(min(vmem_bytes // 2, 32 << 20))

    # ---------------- fused path: whole array VMEM-resident ----------------
    if 6 * x_f32_bytes <= fused_limit:
        out_f = pl.pallas_call(
            functools.partial(_fused_kernel, m_total=float(M), feat=D, eps=EPS),
            out_shape=jax.ShapeDtypeStruct((m_f, lane), out_dtype),
            grid=(1,),
            in_specs=[
                pl.BlockSpec((m_f, lane), lambda i: (0, 0)),
                pl.BlockSpec((1, lane), lambda i: (0, 0)),
                pl.BlockSpec((1, lane), lambda i: (0, 0)),
            ],
            out_specs=pl.BlockSpec((m_f, lane), lambda i: (0, 0)),
            compiler_params=pltpu.CompilerParams(
                dimension_semantics=("arbitrary",),
                vmem_limit_bytes=fused_limit,
            ),
        )(x_f, gamma_l, beta_l)
        return out_f.reshape(orig_shape)

    # ---------------- streaming path: two pipelined passes ----------------
    budget = min(vmem_bytes // 4, 32 << 20)
    # ~ 2x in bufs + 2x out bufs (pass 2) + fp32 temps per row
    tm_cap = max(8, (budget // (lane * (4 * itemsize + 8))) // 8 * 8)
    if tm_cap >= _CHUNK:
        tm = min(4096, (tm_cap // _CHUNK) * _CHUNK)
        chunk = _CHUNK
    else:
        tm = tm_cap
        chunk = tm

    total_tiles = _cdiv(m_f, tm)
    tiles_per_split = _cdiv(total_tiles, _NUM_SPLITS)
    last_block = total_tiles - 1
    # Mask whenever there is any overhang (ragged last tile OR split overhang).
    ragged = (_NUM_SPLITS * tiles_per_split * tm) != m_f

    tile_bytes = tm * lane * itemsize
    vmem_limit = int(min(vmem_bytes * 3 // 4,
                         max(16 << 20,
                             5 * tile_bytes + 4 * chunk * lane * 4 + (2 << 20))))

    def x_index(c, t):
        # Clamp so the DMA never targets a block past the array end; the
        # kernel's unclamped-row mask zeroes any duplicated contribution.
        return (jnp.minimum(c * tiles_per_split + t, last_block), 0)

    psum, psq = pl.pallas_call(
        functools.partial(_partial_stats_kernel,
                          ragged=ragged, m_valid=m_f, chunk=chunk),
        out_shape=(
            jax.ShapeDtypeStruct((_NUM_SPLITS, 8, lane), jnp.float32),
            jax.ShapeDtypeStruct((_NUM_SPLITS, 8, lane), jnp.float32),
        ),
        grid=(_NUM_SPLITS, tiles_per_split),
        in_specs=[pl.BlockSpec((tm, lane), x_index)],
        out_specs=(
            pl.BlockSpec((1, 8, lane), lambda c, t: (c, 0, 0)),
            pl.BlockSpec((1, 8, lane), lambda c, t: (c, 0, 0)),
        ),
        compiler_params=pltpu.CompilerParams(
            dimension_semantics=("parallel", "arbitrary"),
            vmem_limit_bytes=vmem_limit,
        ),
        cost_estimate=pl.CostEstimate(
            flops=3 * M * D, transcendentals=0,
            bytes_accessed=M * D * itemsize),
    )(x_f)

    # Tiny per-feature finalize on (D,)-sized tensors (outside the kernel).
    s_tot = psum.sum(axis=(0, 1))                      # (lane,)
    q_tot = psq.sum(axis=(0, 1))
    if groups > 1:
        s_tot = s_tot.reshape(groups, D).sum(axis=0)   # (D,)
        q_tot = q_tot.reshape(groups, D).sum(axis=0)
    mean = s_tot / M
    var = q_tot / M - mean * mean                      # biased variance
    scale = gamma.astype(jnp.float32) * lax.rsqrt(var + EPS)
    bias = beta.astype(jnp.float32) - mean * scale
    scale_l = jnp.tile(scale.reshape(1, D), (1, groups))
    bias_l = jnp.tile(bias.reshape(1, D), (1, groups))

    out_f = pl.pallas_call(
        _apply_kernel,
        out_shape=jax.ShapeDtypeStruct((m_f, lane), out_dtype),
        grid=(total_tiles,),
        in_specs=[
            pl.BlockSpec((tm, lane), lambda i: (i, 0)),
            pl.BlockSpec((1, lane), lambda i: (0, 0)),   # scale resident
            pl.BlockSpec((1, lane), lambda i: (0, 0)),   # bias  resident
        ],
        out_specs=pl.BlockSpec((tm, lane), lambda i: (i, 0)),
        compiler_params=pltpu.CompilerParams(
            dimension_semantics=("parallel",),
            vmem_limit_bytes=vmem_limit,
        ),
        cost_estimate=pl.CostEstimate(
            flops=2 * M * D, transcendentals=0,
            bytes_accessed=2 * M * D * itemsize),
    )(x_f, scale_l, bias_l)

    return out_f.reshape(orig_shape)


def _ref_batchnorm(x, gamma, beta):
    D = x.shape[-1]
    x2 = x.reshape(-1, D)
    mean = x2.mean(axis=0, keepdims=True)
    var = ((x2 - mean) ** 2).mean(axis=0, keepdims=True)
    return ((x2 - mean) / jnp.sqrt(var + EPS) * gamma + beta).reshape(x.shape)


if __name__ == "__main__":
    # Small shapes consistent with the module: (batch, graph_size, embed_dim)
    B, N, D = 2, 8, 32

    key = jax.random.PRNGKey(0)
    kx, kg, kb = jax.random.split(key, 3)
    x = jax.random.normal(kx, (B, N, D), dtype=jnp.float32)

    # Deterministic parameter init mimicking init_parameters():
    # uniform(-stdv, stdv) with stdv = 1/sqrt(param.size(-1)) = 1/sqrt(D)
    stdv = 1.0 / math.sqrt(D)
    gamma = jax.random.uniform(kg, (D,), minval=-stdv, maxval=stdv, dtype=jnp.float32)
    beta = jax.random.uniform(kb, (D,), minval=-stdv, maxval=stdv, dtype=jnp.float32)

    out = normalization_batch(x, gamma, beta)          # fused (VMEM-resident) path
    jax.block_until_ready(out)
    assert jnp.allclose(out, _ref_batchnorm(x, gamma, beta), atol=1e-4, rtol=1e-4), \
        "fused-path mismatch vs reference"

    # Also exercise the streaming path (ragged tile count, masked last tile,
    # split overhang, partial output write-back).
    B2, N2, D2 = 33, 500, 128
    x2 = jax.random.normal(jax.random.PRNGKey(1), (B2, N2, D2), dtype=jnp.float32)
    g2 = jax.random.uniform(jax.random.PRNGKey(2), (D2,), minval=-0.1, maxval=0.1,
                            dtype=jnp.float32)
    b2 = jax.random.uniform(jax.random.PRNGKey(3), (D2,), minval=-0.1, maxval=0.1,
                            dtype=jnp.float32)
    out2 = normalization_batch(x2, g2, b2)
    jax.block_until_ready(out2)
    assert jnp.allclose(out2, _ref_batchnorm(x2, g2, b2), atol=1e-3, rtol=1e-3), \
        "streaming-path mismatch vs reference"

    print("KERNEL_OK")
</pallas_src>

<mosaic_0001>
module attributes {stable_mosaic.version = 11 : i64} {
  func.func @_fused_kernel(%arg0: i32, %arg1: memref<4x128xf32, #tpu.memory_space<vmem>>, %arg2: memref<1x128xf32, #tpu.memory_space<vmem>>, %arg3: memref<1x128xf32, #tpu.memory_space<vmem>>, %arg4: memref<4x128xf32, #tpu.memory_space<vmem>>) attributes {dimension_semantics = [#tpu.dimension_semantics<arbitrary>], iteration_bounds = array<i64: 1>, scalar_prefetch = 0 : i64, scratch_operands = 0 : i64, tpu.core_type = #tpu.core_type<tc>, window_params = [{pipeline_mode = #tpu.pipeline_mode<synchronous>, transform_indices = @transform_0, window_bounds = array<i64: 4, 128>}, {pipeline_mode = #tpu.pipeline_mode<synchronous>, transform_indices = @transform_1, window_bounds = array<i64: 1, 128>}, {pipeline_mode = #tpu.pipeline_mode<synchronous>, transform_indices = @transform_2, window_bounds = array<i64: 1, 128>}, {pipeline_mode = #tpu.pipeline_mode<synchronous>, transform_indices = @transform_3, window_bounds = array<i64: 4, 128>}]} {
    %c0 = arith.constant 0 : index
    %c0_0 = arith.constant 0 : index
    %0 = vector.load %arg1[%c0, %c0_0] : memref<4x128xf32, #tpu.memory_space<vmem>>, vector<4x128xf32>
    %cst = arith.constant dense<0.000000e+00> : vector<128xf32>
    %1 = vector.multi_reduction <add>, %0, %cst [0] : vector<4x128xf32> to vector<128xf32>
    %2 = vector.shape_cast %1 : vector<128xf32> to vector<1x128xf32>
    %3 = arith.mulf %0, %0 : vector<4x128xf32>
    %cst_1 = arith.constant dense<0.000000e+00> : vector<128xf32>
    %4 = vector.multi_reduction <add>, %3, %cst_1 [0] : vector<4x128xf32> to vector<128xf32>
    %5 = vector.shape_cast %4 : vector<128xf32> to vector<1x128xf32>
    %c64_i32 = arith.constant 64 : i32
    %6 = tpu.dynamic_rotate %2 by %c64_i32 dim 1 : vector<1x128xf32>, i32 -> vector<1x128xf32>
    %7 = arith.addf %2, %6 : vector<1x128xf32>
    %c64_i32_2 = arith.constant 64 : i32
    %8 = tpu.dynamic_rotate %5 by %c64_i32_2 dim 1 : vector<1x128xf32>, i32 -> vector<1x128xf32>
    %9 = arith.addf %5, %8 : vector<1x128xf32>
    %c32_i32 = arith.constant 32 : i32
    %10 = tpu.dynamic_rotate %7 by %c32_i32 dim 1 : vector<1x128xf32>, i32 -> vector<1x128xf32>
    %11 = arith.addf %7, %10 : vector<1x128xf32>
    %c32_i32_3 = arith.constant 32 : i32
    %12 = tpu.dynamic_rotate %9 by %c32_i32_3 dim 1 : vector<1x128xf32>, i32 -> vector<1x128xf32>
    %13 = arith.addf %9, %12 : vector<1x128xf32>
    %cst_4 = arith.constant 6.250000e-02 : f32
    %14 = vector.broadcast %cst_4 : f32 to vector<1x128xf32>
    %15 = arith.mulf %11, %14 : vector<1x128xf32>
    %cst_5 = arith.constant 6.250000e-02 : f32
    %16 = vector.broadcast %cst_5 : f32 to vector<1x128xf32>
    %17 = arith.mulf %13, %16 : vector<1x128xf32>
    %18 = arith.mulf %15, %15 : vector<1x128xf32>
    %19 = arith.subf %17, %18 : vector<1x128xf32>
    %c0_6 = arith.constant 0 : index
    %c0_7 = arith.constant 0 : index
    %20 = vector.load %arg2[%c0_6, %c0_7] : memref<1x128xf32, #tpu.memory_space<vmem>>, vector<1x128xf32>
    %cst_8 = arith.constant 9.99999974E-6 : f32
    %21 = vector.broadcast %cst_8 : f32 to vector<1x128xf32>
    %22 = arith.addf %19, %21 : vector<1x128xf32>
    %23 = math.rsqrt %22 : vector<1x128xf32>
    %24 = arith.mulf %20, %23 : vector<1x128xf32>
    %c0_9 = arith.constant 0 : index
    %c0_10 = arith.constant 0 : index
    %25 = vector.load %arg3[%c0_9, %c0_10] : memref<1x128xf32, #tpu.memory_space<vmem>>, vector<1x128xf32>
    %26 = arith.mulf %15, %24 : vector<1x128xf32>
    %27 = arith.subf %25, %26 : vector<1x128xf32>
    %28 = vector.broadcast %24 : vector<1x128xf32> to vector<4x128xf32>
    %29 = arith.mulf %0, %28 : vector<4x128xf32>
    %30 = vector.broadcast %27 : vector<1x128xf32> to vector<4x128xf32>
    %31 = arith.addf %29, %30 : vector<4x128xf32>
    %c0_11 = arith.constant 0 : index
    %c0_12 = arith.constant 0 : index
    %32 = vector.load %arg4[%c0_11, %c0_12] : memref<4x128xf32, #tpu.memory_space<vmem>>, vector<4x128xf32>
    tpu.vector_store %arg4[%c0_11, %c0_12], %31 {strides = array<i32>} : memref<4x128xf32, #tpu.memory_space<vmem>>, vector<4x128xf32>,
    return
  }
  func.func @transform_0(%arg0: i32) -> (i32, i32) {
    %c0_i32 = arith.constant 0 : i32
    %c0_i32_0 = arith.constant 0 : i32
    %c0_i32_1 = arith.constant 0 : i32
    return %c0_i32, %c0_i32_0 : i32, i32
  }
  func.func @transform_1(%arg0: i32) -> (i32, i32) {
    %c0_i32 = arith.constant 0 : i32
    %c0_i32_0 = arith.constant 0 : i32
    %c0_i32_1 = arith.constant 0 : i32
    return %c0_i32, %c0_i32_0 : i32, i32
  }
  func.func @transform_2(%arg0: i32) -> (i32, i32) {
    %c0_i32 = arith.constant 0 : i32
    %c0_i32_0 = arith.constant 0 : i32
    %c0_i32_1 = arith.constant 0 : i32
    return %c0_i32, %c0_i32_0 : i32, i32
  }
  func.func @transform_3(%arg0: i32) -> (i32, i32) {
    %c0_i32 = arith.constant 0 : i32
    %c0_i32_0 = arith.constant 0 : i32
    %c0_i32_1 = arith.constant 0 : i32
    return %c0_i32, %c0_i32_0 : i32, i32
  }
}

</mosaic_0001>

<bundles_post_ra>
// kernel: tpu_custom_call.1
= control target key start
LH: loop header
LB: loop body
LE: loop exit
PB: predicated region body
PF: predicated region fallthrough
CT: control target
= control target key end

     0   :  { %8 = vsyncpa [#allocation3], 0  ;;  %s183_s0 = inlined_call_operand.hbm [shape: f32[4,128], index: 0, kind: input, shape index: {}]   ;;  %s184_s1 = inlined_call_operand.vmem [shape: f32[1,128], index: 1, kind: input, shape index: {}]   ;;  %s185_s2 = inlined_call_operand.vmem [shape: f32[1,128], index: 2, kind: input, shape index: {}]   ;;  %s186_s3 = inlined_call_operand.hbm [shape: f32[4,128], index: 3, kind: output, shape index: {}]  }
   0x1   :  { %9 = vsyncpa [#allocation4], 0  ;;  %s147_s12 = smov [#allocation2]  }
   0x2   :  { %s16_s13 = sshll.u32 %s147_s12, 4  ;;  %s17_s13 = int_to_ptr.vmem [resolvable:$true] %s16_s13 }
   0x3   :  { %s111_s14 = scalar_lea.vmem %s17_s13, 64  ;;  %p116_p1 = scmp.lt.s32.totalorder %s17_s13, %s17_s13 }
   0x4   :  { %p112_p0 = scmp.ne.s32.totalorder %s17_s13, %s111_s14  ;;  %p117_p2 = scmp.lt.s32.totalorder %s111_s14, %s111_s14 }
   0x6   :  { %p118_p3 = por %p117_p2, %p116_p1 }
   0x8   :  { %p119_p4 = pnand %p118_p3, %p112_p0 }
   0xa   :  { %122 = shalt.err (!%p119_p4)
}
   0xb   :  { %19 = dma.hbm_to_vmem [thread:$0]  %s183_s0, 64, %s17_s13, [#allocation3]  }
   0xc   :  { %143 = dma.done.wait [#allocation3], 64  }
   0xd   :  { %144 = vsyncadd [#allocation3], 4294967232  ;;  %vm28_vm0 = vcmask 1043456   ;;  %v27_v0 = vld [vmem:[#allocation2] sm:$0xf]  ;;  %s148_s17 = smov 64   ;;  %v68_v29 = vlaneseq }
   0xe   :  { %v29_v1 = vsel %vm28_vm0, %v27_v0, 0.0  ;;  %v36_v2 = vmul.f32 %v27_v0, %v27_v0  ;;  %s149_s0 = smov 32   ;;  %v60_v31 = vld [vmem:[%s184_s1] sm:$0x1]  ;;  %s150_s22 = smov [#allocation5]  }
   0xf   :  { %v30_v3 = vrot.slane %v29_v1, 4  ;;  %v69_v30 = vshrl.u32 %v68_v29, 7  ;;  %v64_v35 = vld [vmem:[%s185_s2] sm:$0x1]  ;;  %s88_s23 = sshll.u32 %s150_s22, 4  ;;  %s89_s23 = int_to_ptr.vmem [resolvable:$true] %s88_s23 }
  0x10   :  { %v37_v4 = vsel %vm28_vm0, %v36_v2, 0.0  ;;  %s123_s24 = scalar_lea.vmem %s89_s23, 64  ;;  %p128_p6 = scmp.lt.s32.totalorder %s89_s23, %s89_s23 }
  0x11   :  { %v31_v5 = vadd.f32 %v30_v3, %v29_v1  ;;  %v38_v6 = vrot.slane %v37_v4, 4  ;;  %v70_v32 = vsub.s32 0, %v69_v30  ;;  %p124_p5 = scmp.ne.s32.totalorder %s89_s23, %s123_s24  ;;  %p129_p7 = scmp.lt.s32.totalorder %s123_s24, %s123_s24 }
  0x13   :  { %v32_v7 = vrot.slane %v31_v5, 2  ;;  %v39_v8 = vadd.f32 %v38_v6, %v37_v4  ;;  %p130_p8 = por %p129_p7, %p128_p6 }
  0x15   :  { %v33_v9 = vadd.f32 %v32_v7, %v31_v5  ;;  %v40_v10 = vrot.slane %v39_v8, 2  ;;  %p131_p9 = pnand %p130_p8, %p124_p5 }
  0x17   :  { %v34_v11 = vrot.slane %v33_v9, 1  ;;  %v41_v12 = vadd.f32 %v40_v10, %v39_v8 }
  0x19   :  { %v35_v13 = vadd.f32 %v34_v11, %v33_v9  ;;  %v42_v14 = vrot.slane %v41_v12, 1 }
  0x1b   :  { %44 = vrot.lane.b32.xlu0 %v35_v13, %s148_s17  ;;  %v43_v15 = vadd.f32 %v42_v14, %v41_v12 }
  0x1f   :  { %47 = vrot.lane.b32.xlu0 %v43_v15, %s148_s17 }
  0x8d   :  { %v45_v16 = vpop.permute.xlu0 %44 }
  0x8e   :  { %v46_v17 = vadd.f32 %v45_v16, %v35_v13 }
  0x90   :  { %50 = vrot.lane.b32.xlu1 %v46_v17, %s149_s0 }
  0x91   :  { %v48_v18 = vpop.permute.xlu0 %47 }
  0x92   :  { %v49_v19 = vadd.f32 %v48_v18, %v43_v15 }
  0x94   :  { %53 = vrot.lane.b32.xlu1 %v49_v19, %s149_s0 }
 0x102   :  { %v51_v20 = vpop.permute.xlu1 %50 }
 0x103   :  { %v52_v21 = vadd.f32 %v51_v20, %v46_v17 }
 0x105   :  { %v56_v22 = vmul.f32 0.0625, %v52_v21 }
 0x106   :  { %v54_v23 = vpop.permute.xlu1 %53 }
 0x107   :  { %v55_v24 = vadd.f32 %v54_v23, %v49_v19  ;;  %v58_v25 = vmul.f32 %v56_v22, %v56_v22 }
 0x109   :  { %v57_v26 = vmul.f32 0.0625, %v55_v24 }
 0x10b   :  { %v59_v27 = vsub.f32 %v57_v26, %v58_v25 }
 0x10d   :  { %v61_v28 = vadd.f32 1e-05, %v59_v27 }
 0x10f   :  { %101 = vrsqrt.f32 %v61_v28 }
 0x11c   :  { %v102_v33 = vpop.eup %101 }
 0x11d   :  { %v63_v34 = vmul.f32 %v102_v33, %v60_v31 }
 0x11f   :  { %v65_v36 = vmul.f32 %v63_v34, %v56_v22  ;;  %v71_v37 = vrot.slane %v63_v34, %v70_v32 }
 0x121   :  { %v66_v38 = vsub.f32 %v64_v35, %v65_v36  ;;  %v73_v39 = vmul.f32 %v71_v37, %v27_v0 }
 0x123   :  { %v78_v40 = vrot.slane %v66_v38, %v70_v32 }
 0x125   :  { %v80_v41 = vadd.f32 %v78_v40, %v73_v39 }
 0x127   :  { %81 = vst [vmem:[#allocation5] sm:$0xf] %v80_v41 }
 0x128   :  { %134 = shalt.err (!%p131_p9)
}
 0x129   :  { %91 = dma.vmem_to_hbm [thread:$0]  %s89_s23, 64, %s186_s3, [#allocation4]  }
 0x12a   :  { %145 = dma.done.wait [#allocation4], 64  }
 0x12b   :  { %146 = vsyncadd [#allocation4], 4294967232 }
 0x12c   :  { %95 = vsyncpa [#allocation3], 1 }
 0x12d   :  { %96 = vsyncpa [#allocation4], 1 }

</bundles_post_ra>
